<compile_context>
chip_gen: v7x
topology: tpu7x:2x2x1
jax: 0.10.0
libtpu: 0.0.40
codegen_flags: <defaults>
</compile_context>

<pallas_src>
import functools

import jax
import jax.numpy as jnp
from jax import lax
from jax.experimental import pallas as pl
from jax.experimental.pallas import tpu as pltpu


def _round_up(x, m):
    return (x + m - 1) // m * m


def _vmem_limit_bytes():
    """Use most of physical VMEM (128 MiB on v5e/v6e, 64 MiB on v7x)."""
    try:
        cap = int(pltpu.get_tpu_info().vmem_capacity_bytes)
        return max(min(cap - (8 << 20), 100 << 20), 32 << 20)
    except Exception:
        return 48 << 20  # safe on every generation


def _rnn_kernel(x_ref, h0_ref, wi_ref, wh_ref, bh_ref, out_ref,
                pre_ref, h_ref, *, n_sub, unroll):
    """One grid step = T_BLK timesteps of the Elman recurrence for one batch shard.

    x_ref  : (T_BLK, B_SHARD, I)          raw inputs for this time block
    h0_ref : (B_SHARD, H_PAD)             initial hidden state for this shard
    wi_ref : (I, H_PAD)                   Wi^T, whole array resident in VMEM (1 copy)
    wh_ref : (H_PAD, H_PAD)               Wh^T, whole array resident in VMEM (1 copy)
    bh_ref : (1, H_PAD)                   hidden bias
    out_ref: (T_BLK, B_SHARD, H_PAD)      stacked hidden states for this block
    pre_ref: (T_BLK*B_SHARD, H_PAD) f32   scratch for the fused input projection
    h_ref  : (B_SHARD, H_PAD) f32         hidden state carried across time blocks
    """
    t_idx = pl.program_id(1)

    # (Re-)initialize the carried hidden state at the start of each batch shard.
    @pl.when(t_idx == 0)
    def _():
        h_ref[...] = h0_ref[...]

    # Loop-invariant operands: loaded once per grid step, never inside the loop.
    wi_t = wi_ref[...]          # (I, H_PAD)
    wh_t = wh_ref[...]          # (H_PAD, H_PAD)
    bias = bh_ref[...]          # (1, H_PAD) -> broadcast over rows

    t_blk, b_shard, in_dim = x_ref.shape
    sub = b_shard // n_sub

    # ---- Fused input projection (hoisted out of the serial recurrence) ------
    # pre[t*B_SHARD + b] = x[t, b] @ Wi^T + b_h, computed as a few large
    # (chunk*B_SHARD, I) @ (I, H_PAD) MXU matmuls written straight into VMEM
    # scratch -- no pre_x round trip through HBM.  B_SHARD is a multiple of 8
    # so collapsing (tc, B_SHARD, I) -> (tc*B_SHARD, I) is sublane-tile aligned.
    chunk = max(1, min(t_blk, 512 // b_shard))
    for t0 in range(0, t_blk, chunk):
        tc = min(chunk, t_blk - t0)
        x2d = x_ref[pl.ds(t0, tc), :, :].reshape(tc * b_shard, in_dim)
        pre_ref[pl.ds(t0 * b_shard, tc * b_shard), :] = (
            jnp.dot(x2d, wi_t, preferred_element_type=jnp.float32) + bias)

    # ---- Serial recurrence: h_t = tanh(pre_t + h_{t-1} @ Wh^T) --------------
    # Two independent batch sub-shards are interleaved so one sub-shard's EUP
    # tanh can overlap the other's MXU matmul (different VLIW slots, no data
    # dependency between the sub-shards within a step).
    def step(t, carry):
        dots = [jnp.dot(h_s, wh_t, preferred_element_type=jnp.float32)
                for h_s in carry]
        new = []
        for s, d in enumerate(dots):
            row = pl.multiple_of(t * b_shard + s * sub, 8)
            h_new = jnp.tanh(pre_ref[pl.ds(row, sub), :] + d)
            out_ref[t, pl.ds(s * sub, sub), :] = h_new.astype(out_ref.dtype)
            new.append(h_new)
        return tuple(new)

    carry0 = tuple(h_ref[pl.ds(s * sub, sub), :] for s in range(n_sub))
    carry = lax.fori_loop(0, t_blk, step, carry0, unroll=unroll)
    for s in range(n_sub):
        h_ref[pl.ds(s * sub, sub), :] = carry[s]


def rnn_forward(x, wi, wh, bh, h0=None, *, t_blk=32, b_shard=None):
    """Pallas RNN forward.

    x : (S, B, I) float32 (time-major), wi: (H, I), wh: (H, H), bh: (H,)
    h0: optional (B, H); defaults to zeros (same as the PyTorch forward).
    Returns (S, B, H): the stacked hidden states h_1..h_S.
    """
    S, B, I = x.shape
    H = wi.shape[0]
    x = jnp.asarray(x, jnp.float32)
    wi = jnp.asarray(wi, jnp.float32)
    wh = jnp.asarray(wh, jnp.float32)
    bh = jnp.asarray(bh, jnp.float32)
    if h0 is None:
        h0 = jnp.zeros((B, H), jnp.float32)
    h0 = jnp.asarray(h0, jnp.float32)

    # ---- TPU-friendly tile sizes --------------------------------------------
    H_PAD = _round_up(H, 128)              # lane-dense stores + MXU-shaped N/K
    if b_shard is None:
        # One large batch shard (fewer serial re-runs of the time loop, bigger
        # M for the MXU), capped at 128 rows so big batches still split into
        # >=2 shards and feed both TensorCores on v7x via the "parallel" axis.
        # On v7x with 16 <= B <= 256, prefer b_shard=round_up(ceil(B/2),16).
        b_shard = min(_round_up(B, 16), 128)
    B_SHARD = _round_up(b_shard, 8)
    n_sub = 2 if B_SHARD % 16 == 0 else 1   # interleaved sub-shards in-kernel
    B_PAD = _round_up(B, B_SHARD)
    T_BLK = min(t_blk, S)                   # timesteps per grid step
    S_PAD = _round_up(S, T_BLK)
    n_b = B_PAD // B_SHARD
    n_t = S_PAD // T_BLK

    # Keep the unrolled loop's live state comfortably inside the 64x4 KiB vreg
    # file; beyond that, partial unroll avoids spill traffic (vld/vst slots).
    carry_bytes = B_SHARD * H_PAD * 4
    if carry_bytes <= 32 * 1024:
        unroll = True
    elif carry_bytes <= 96 * 1024:
        unroll = 4
    else:
        unroll = 2

    # Zero padding is exact: padded Wi^T columns, Wh^T rows/cols and bias lanes
    # are zero, so padded hidden lanes stay exactly 0 forever.  Padded batch
    # rows / trailing timesteps are computed (cheap, tanh-bounded) and sliced.
    wi_t = jnp.zeros((I, H_PAD), jnp.float32).at[:, :H].set(wi.T)
    wh_t = jnp.zeros((H_PAD, H_PAD), jnp.float32).at[:H, :H].set(wh.T)
    bh_p = jnp.zeros((1, H_PAD), jnp.float32).at[0, :H].set(bh)
    h0_p = jnp.zeros((B_PAD, H_PAD), jnp.float32).at[:B, :H].set(h0)
    x_p = x
    if (S_PAD, B_PAD) != (S, B):
        x_p = jnp.zeros((S_PAD, B_PAD, I), jnp.float32).at[:S, :B, :].set(x)

    kernel = functools.partial(_rnn_kernel, n_sub=n_sub, unroll=unroll)

    grid_spec = pltpu.PrefetchScalarGridSpec(
        num_scalar_prefetch=0,
        grid=(n_b, n_t),
        in_specs=[
            # Raw inputs, pipelined (double-buffered) over the time blocks.
            pl.BlockSpec((T_BLK, B_SHARD, I), lambda b, t: (t, b, 0)),
            # Initial hidden state; block index constant in t -> fetched once
            # per batch shard.
            pl.BlockSpec((B_SHARD, H_PAD), lambda b, t: (b, 0)),
            # Loop-invariant weights/bias: whole array resident in VMEM as a
            # SINGLE copy (not run through the double-buffered block pipeline).
            pl.BlockSpec(memory_space=pltpu.MemorySpace.VMEM),   # Wi^T
            pl.BlockSpec(memory_space=pltpu.MemorySpace.VMEM),   # Wh^T
            pl.BlockSpec(memory_space=pltpu.MemorySpace.VMEM),   # b_h
        ],
        out_specs=pl.BlockSpec((T_BLK, B_SHARD, H_PAD), lambda b, t: (t, b, 0)),
        scratch_shapes=[
            pltpu.VMEM((T_BLK * B_SHARD, H_PAD), jnp.float32),   # fused pre-activation
            pltpu.VMEM((B_SHARD, H_PAD), jnp.float32),           # carried hidden state
        ],
    )

    out_padded = pl.pallas_call(
        kernel,
        out_shape=jax.ShapeDtypeStruct((S_PAD, B_PAD, H_PAD), jnp.float32),
        grid_spec=grid_spec,
        compiler_params=pltpu.CompilerParams(
            # Batch shards are independent (both TCs on v7x); time is serial.
            dimension_semantics=("parallel", "arbitrary"),
            vmem_limit_bytes=_vmem_limit_bytes(),
        ),
    )(x_p, h0_p, wi_t, wh_t, bh_p)

    return out_padded[:S, :B, :H]


def rnn_forward_ref(x, wi, wh, bh, h0=None):
    """Pure-JAX reference matching the PyTorch forward."""
    S, B, I = x.shape
    H = wi.shape[0]
    if h0 is None:
        h0 = jnp.zeros((B, H), dtype=jnp.float32)

    def step(h, x_t):
        h_new = jnp.tanh(x_t @ wi.T + h @ wh.T + bh)
        return h_new, h_new

    _, hs = lax.scan(step, h0, x)
    return hs


if __name__ == "__main__":
    # Small deterministic shapes consistent with the module's forward:
    # x: (seq, batch, input_size).
    SEQ, BATCH, INPUT, HIDDEN, OUTPUT = 8, 4, 16, 32, 10

    key = jax.random.PRNGKey(0)
    kx, kwi, kwh, kbh, kwd, kbd = jax.random.split(key, 6)

    x = jax.random.normal(kx, (SEQ, BATCH, INPUT), dtype=jnp.float32)

    # PyTorch Linear-style uniform init bounds.
    wi = jax.random.uniform(kwi, (HIDDEN, INPUT), jnp.float32,
                            minval=-1.0 / INPUT ** 0.5, maxval=1.0 / INPUT ** 0.5)
    wh = jax.random.uniform(kwh, (HIDDEN, HIDDEN), jnp.float32,
                            minval=-1.0 / HIDDEN ** 0.5, maxval=1.0 / HIDDEN ** 0.5)
    bh = jax.random.uniform(kbh, (HIDDEN,), jnp.float32,
                            minval=-1.0 / HIDDEN ** 0.5, maxval=1.0 / HIDDEN ** 0.5)
    # Decoder params exist in __init__ but are NOT used by forward() (only decode()).
    wd = jax.random.uniform(kwd, (OUTPUT, HIDDEN), jnp.float32,
                            minval=-1.0 / HIDDEN ** 0.5, maxval=1.0 / HIDDEN ** 0.5)
    bd = jax.random.uniform(kbd, (OUTPUT,), jnp.float32,
                            minval=-1.0 / HIDDEN ** 0.5, maxval=1.0 / HIDDEN ** 0.5)

    out = jax.block_until_ready(jax.jit(rnn_forward)(x, wi, wh, bh))
    ref = jax.block_until_ready(rnn_forward_ref(x, wi, wh, bh))

    assert out.shape == (SEQ, BATCH, HIDDEN)
    assert jnp.allclose(out, ref, atol=1e-4, rtol=1e-4), "mismatch vs JAX reference"

    print("KERNEL_OK")
</pallas_src>

<mosaic_0001>
module attributes {stable_mosaic.version = 11 : i64} {
  func.func @_rnn_kernel(%arg0: i32, %arg1: i32, %arg2: memref<8x16x16xf32, #tpu.memory_space<vmem>>, %arg3: memref<16x128xf32, #tpu.memory_space<vmem>>, %arg4: memref<16x128xf32, #tpu.memory_space<vmem>>, %arg5: memref<128x128xf32, #tpu.memory_space<vmem>>, %arg6: memref<1x128xf32, #tpu.memory_space<vmem>>, %arg7: memref<8x16x128xf32, #tpu.memory_space<vmem>>, %arg8: memref<128x128xf32, #tpu.memory_space<vmem>>, %arg9: memref<16x128xf32, #tpu.memory_space<vmem>>) attributes {dimension_semantics = [#tpu.dimension_semantics<parallel>, #tpu.dimension_semantics<arbitrary>], iteration_bounds = array<i64: 1, 1>, scalar_prefetch = 0 : i64, scratch_operands = 2 : i64, tpu.core_type = #tpu.core_type<tc>, window_params = [{transform_indices = @transform_0, window_bounds = array<i64: 8, 16, 16>}, {transform_indices = @transform_1, window_bounds = array<i64: 16, 128>}, {pipeline_mode = #tpu.pipeline_mode<synchronous>, transform_indices = @transform_2, window_bounds = array<i64: 16, 128>}, {pipeline_mode = #tpu.pipeline_mode<synchronous>, transform_indices = @transform_3, window_bounds = array<i64: 128, 128>}, {pipeline_mode = #tpu.pipeline_mode<synchronous>, transform_indices = @transform_4, window_bounds = array<i64: 1, 128>}, {transform_indices = @transform_5, window_bounds = array<i64: 8, 16, 128>}]} {
    %c0_i32 = arith.constant 0 : i32
    %0 = arith.cmpi eq, %arg1, %c0_i32 : i32
    %1 = arith.extui %0 : i1 to i32
    %c0_i32_0 = arith.constant 0 : i32
    %2 = arith.cmpi ne, %1, %c0_i32_0 : i32
    scf.if %2 {
      %c0_114 = arith.constant 0 : index
      %c0_115 = arith.constant 0 : index
      %208 = vector.load %arg3[%c0_114, %c0_115] : memref<16x128xf32, #tpu.memory_space<vmem>>, vector<16x128xf32>
      %c0_116 = arith.constant 0 : index
      %c0_117 = arith.constant 0 : index
      %209 = vector.load %arg9[%c0_116, %c0_117] : memref<16x128xf32, #tpu.memory_space<vmem>>, vector<16x128xf32>
      tpu.vector_store %arg9[%c0_116, %c0_117], %208 {strides = array<i32>} : memref<16x128xf32, #tpu.memory_space<vmem>>, vector<16x128xf32>,
    } else {
    }
    %c0 = arith.constant 0 : index
    %c0_1 = arith.constant 0 : index
    %3 = vector.load %arg4[%c0, %c0_1] : memref<16x128xf32, #tpu.memory_space<vmem>>, vector<16x128xf32>
    %c0_2 = arith.constant 0 : index
    %c0_3 = arith.constant 0 : index
    %4 = vector.load %arg5[%c0_2, %c0_3] : memref<128x128xf32, #tpu.memory_space<vmem>>, vector<128x128xf32>
    %c0_4 = arith.constant 0 : index
    %c0_5 = arith.constant 0 : index
    %5 = vector.load %arg6[%c0_4, %c0_5] : memref<1x128xf32, #tpu.memory_space<vmem>>, vector<1x128xf32>
    %c0_6 = arith.constant 0 : index
    %c0_7 = arith.constant 0 : index
    %c0_8 = arith.constant 0 : index
    %6 = vector.load %arg2[%c0_6, %c0_7, %c0_8] : memref<8x16x16xf32, #tpu.memory_space<vmem>>, vector<8x16x16xf32>
    %7 = vector.shape_cast %6 : vector<8x16x16xf32> to vector<128x16xf32>
    %cst = arith.constant dense<0.000000e+00> : vector<128x128xf32>
    %8 = tpu.matmul %7, %3, %cst {dimension_numbers = #tpu.dot_dimension_numbers<[1], [0], [0], [1], [0, 0, 1, 1], [], []>} : vector<128x16xf32>, vector<16x128xf32>, vector<128x128xf32> -> vector<128x128xf32>
    %9 = vector.broadcast %5 : vector<1x128xf32> to vector<128x128xf32>
    %10 = arith.addf %8, %9 : vector<128x128xf32>
    %c0_9 = arith.constant 0 : index
    %c0_10 = arith.constant 0 : index
    %11 = vector.load %arg8[%c0_9, %c0_10] : memref<128x128xf32, #tpu.memory_space<vmem>>, vector<128x128xf32>
    tpu.vector_store %arg8[%c0_9, %c0_10], %10 {strides = array<i32>} : memref<128x128xf32, #tpu.memory_space<vmem>>, vector<128x128xf32>,
    %c0_11 = arith.constant 0 : index
    %c0_12 = arith.constant 0 : index
    %12 = vector.load %arg9[%c0_11, %c0_12] : memref<16x128xf32, #tpu.memory_space<vmem>>, vector<8x128xf32>
    %c8 = arith.constant 8 : index
    %c0_13 = arith.constant 0 : index
    %13 = vector.load %arg9[%c8, %c0_13] : memref<16x128xf32, #tpu.memory_space<vmem>>, vector<8x128xf32>
    %c0_i32_14 = arith.constant 0 : i32
    %cst_15 = arith.constant dense<0.000000e+00> : vector<8x128xf32>
    %14 = tpu.matmul %12, %4, %cst_15 {dimension_numbers = #tpu.dot_dimension_numbers<[1], [0], [0], [1], [0, 0, 1, 1], [], []>} : vector<8x128xf32>, vector<128x128xf32>, vector<8x128xf32> -> vector<8x128xf32>
    %cst_16 = arith.constant dense<0.000000e+00> : vector<8x128xf32>
    %15 = tpu.matmul %13, %4, %cst_16 {dimension_numbers = #tpu.dot_dimension_numbers<[1], [0], [0], [1], [0, 0, 1, 1], [], []>} : vector<8x128xf32>, vector<128x128xf32>, vector<8x128xf32> -> vector<8x128xf32>
    %c16_i32 = arith.constant 16 : i32
    %16 = arith.muli %c0_i32_14, %c16_i32 : i32
    %c0_i32_17 = arith.constant 0 : i32
    %17 = arith.addi %16, %c0_i32_17 : i32
    %18 = tpu.assume_multiple %17, 8 : i32
    %19 = arith.index_cast %18 : i32 to index
    %c0_18 = arith.constant 0 : index
    %20 = vector.load %arg8[%19, %c0_18] : memref<128x128xf32, #tpu.memory_space<vmem>>, vector<8x128xf32>
    %21 = arith.addf %20, %14 : vector<8x128xf32>
    %22 = math.tanh %21 : vector<8x128xf32>
    %23 = arith.index_cast %c0_i32_14 : i32 to index
    %c0_19 = arith.constant 0 : index
    %c0_20 = arith.constant 0 : index
    %24 = vector.load %arg7[%23, %c0_19, %c0_20] : memref<8x16x128xf32, #tpu.memory_space<vmem>>, vector<1x8x128xf32>
    %25 = vector.shape_cast %24 : vector<1x8x128xf32> to vector<8x128xf32>
    %26 = vector.shape_cast %22 : vector<8x128xf32> to vector<1x8x128xf32>
    tpu.vector_store %arg7[%23, %c0_19, %c0_20], %26 {strides = array<i32>} : memref<8x16x128xf32, #tpu.memory_space<vmem>>, vector<1x8x128xf32>,
    %c16_i32_21 = arith.constant 16 : i32
    %27 = arith.muli %c0_i32_14, %c16_i32_21 : i32
    %c8_i32 = arith.constant 8 : i32
    %28 = arith.addi %27, %c8_i32 : i32
    %29 = tpu.assume_multiple %28, 8 : i32
    %30 = arith.index_cast %29 : i32 to index
    %c0_22 = arith.constant 0 : index
    %31 = vector.load %arg8[%30, %c0_22] : memref<128x128xf32, #tpu.memory_space<vmem>>, vector<8x128xf32>
    %32 = arith.addf %31, %15 : vector<8x128xf32>
    %33 = math.tanh %32 : vector<8x128xf32>
    %34 = arith.index_cast %c0_i32_14 : i32 to index
    %c8_23 = arith.constant 8 : index
    %c0_24 = arith.constant 0 : index
    %35 = vector.load %arg7[%34, %c8_23, %c0_24] : memref<8x16x128xf32, #tpu.memory_space<vmem>>, vector<1x8x128xf32>
    %36 = vector.shape_cast %35 : vector<1x8x128xf32> to vector<8x128xf32>
    %37 = vector.shape_cast %33 : vector<8x128xf32> to vector<1x8x128xf32>
    tpu.vector_store %arg7[%34, %c8_23, %c0_24], %37 {strides = array<i32>} : memref<8x16x128xf32, #tpu.memory_space<vmem>>, vector<1x8x128xf32>,
    %c1_i32 = arith.constant 1 : i32
    %cst_25 = arith.constant dense<0.000000e+00> : vector<8x128xf32>
    %38 = tpu.matmul %22, %4, %cst_25 {dimension_numbers = #tpu.dot_dimension_numbers<[1], [0], [0], [1], [0, 0, 1, 1], [], []>} : vector<8x128xf32>, vector<128x128xf32>, vector<8x128xf32> -> vector<8x128xf32>
    %cst_26 = arith.constant dense<0.000000e+00> : vector<8x128xf32>
    %39 = tpu.matmul %33, %4, %cst_26 {dimension_numbers = #tpu.dot_dimension_numbers<[1], [0], [0], [1], [0, 0, 1, 1], [], []>} : vector<8x128xf32>, vector<128x128xf32>, vector<8x128xf32> -> vector<8x128xf32>
    %c16_i32_27 = arith.constant 16 : i32
    %40 = arith.muli %c1_i32, %c16_i32_27 : i32
    %c0_i32_28 = arith.constant 0 : i32
    %41 = arith.addi %40, %c0_i32_28 : i32
    %42 = tpu.assume_multiple %41, 8 : i32
    %43 = arith.index_cast %42 : i32 to index
    %c0_29 = arith.constant 0 : index
    %44 = vector.load %arg8[%43, %c0_29] : memref<128x128xf32, #tpu.memory_space<vmem>>, vector<8x128xf32>
    %45 = arith.addf %44, %38 : vector<8x128xf32>
    %46 = math.tanh %45 : vector<8x128xf32>
    %47 = arith.index_cast %c1_i32 : i32 to index
    %c0_30 = arith.constant 0 : index
    %c0_31 = arith.constant 0 : index
    %48 = vector.load %arg7[%47, %c0_30, %c0_31] : memref<8x16x128xf32, #tpu.memory_space<vmem>>, vector<1x8x128xf32>
    %49 = vector.shape_cast %48 : vector<1x8x128xf32> to vector<8x128xf32>
    %50 = vector.shape_cast %46 : vector<8x128xf32> to vector<1x8x128xf32>
    tpu.vector_store %arg7[%47, %c0_30, %c0_31], %50 {strides = array<i32>} : memref<8x16x128xf32, #tpu.memory_space<vmem>>, vector<1x8x128xf32>,
    %c16_i32_32 = arith.constant 16 : i32
    %51 = arith.muli %c1_i32, %c16_i32_32 : i32
    %c8_i32_33 = arith.constant 8 : i32
    %52 = arith.addi %51, %c8_i32_33 : i32
    %53 = tpu.assume_multiple %52, 8 : i32
    %54 = arith.index_cast %53 : i32 to index
    %c0_34 = arith.constant 0 : index
    %55 = vector.load %arg8[%54, %c0_34] : memref<128x128xf32, #tpu.memory_space<vmem>>, vector<8x128xf32>
    %56 = arith.addf %55, %39 : vector<8x128xf32>
    %57 = math.tanh %56 : vector<8x128xf32>
    %58 = arith.index_cast %c1_i32 : i32 to index
    %c8_35 = arith.constant 8 : index
    %c0_36 = arith.constant 0 : index
    %59 = vector.load %arg7[%58, %c8_35, %c0_36] : memref<8x16x128xf32, #tpu.memory_space<vmem>>, vector<1x8x128xf32>
    %60 = vector.shape_cast %59 : vector<1x8x128xf32> to vector<8x128xf32>
    %61 = vector.shape_cast %57 : vector<8x128xf32> to vector<1x8x128xf32>
    tpu.vector_store %arg7[%58, %c8_35, %c0_36], %61 {strides = array<i32>} : memref<8x16x128xf32, #tpu.memory_space<vmem>>, vector<1x8x128xf32>,
    %c2_i32 = arith.constant 2 : i32
    %cst_37 = arith.constant dense<0.000000e+00> : vector<8x128xf32>
    %62 = tpu.matmul %46, %4, %cst_37 {dimension_numbers = #tpu.dot_dimension_numbers<[1], [0], [0], [1], [0, 0, 1, 1], [], []>} : vector<8x128xf32>, vector<128x128xf32>, vector<8x128xf32> -> vector<8x128xf32>
    %cst_38 = arith.constant dense<0.000000e+00> : vector<8x128xf32>
    %63 = tpu.matmul %57, %4, %cst_38 {dimension_numbers = #tpu.dot_dimension_numbers<[1], [0], [0], [1], [0, 0, 1, 1], [], []>} : vector<8x128xf32>, vector<128x128xf32>, vector<8x128xf32> -> vector<8x128xf32>
    %c16_i32_39 = arith.constant 16 : i32
    %64 = arith.muli %c2_i32, %c16_i32_39 : i32
    %c0_i32_40 = arith.constant 0 : i32
    %65 = arith.addi %64, %c0_i32_40 : i32
    %66 = tpu.assume_multiple %65, 8 : i32
    %67 = arith.index_cast %66 : i32 to index
    %c0_41 = arith.constant 0 : index
    %68 = vector.load %arg8[%67, %c0_41] : memref<128x128xf32, #tpu.memory_space<vmem>>, vector<8x128xf32>
    %69 = arith.addf %68, %62 : vector<8x128xf32>
    %70 = math.tanh %69 : vector<8x128xf32>
    %71 = arith.index_cast %c2_i32 : i32 to index
    %c0_42 = arith.constant 0 : index
    %c0_43 = arith.constant 0 : index
    %72 = vector.load %arg7[%71, %c0_42, %c0_43] : memref<8x16x128xf32, #tpu.memory_space<vmem>>, vector<1x8x128xf32>
    %73 = vector.shape_cast %72 : vector<1x8x128xf32> to vector<8x128xf32>
    %74 = vector.shape_cast %70 : vector<8x128xf32> to vector<1x8x128xf32>
    tpu.vector_store %arg7[%71, %c0_42, %c0_43], %74 {strides = array<i32>} : memref<8x16x128xf32, #tpu.memory_space<vmem>>, vector<1x8x128xf32>,
    %c16_i32_44 = arith.constant 16 : i32
    %75 = arith.muli %c2_i32, %c16_i32_44 : i32
    %c8_i32_45 = arith.constant 8 : i32
    %76 = arith.addi %75, %c8_i32_45 : i32
    %77 = tpu.assume_multiple %76, 8 : i32
    %78 = arith.index_cast %77 : i32 to index
    %c0_46 = arith.constant 0 : index
    %79 = vector.load %arg8[%78, %c0_46] : memref<128x128xf32, #tpu.memory_space<vmem>>, vector<8x128xf32>
    %80 = arith.addf %79, %63 : vector<8x128xf32>
    %81 = math.tanh %80 : vector<8x128xf32>
    %82 = arith.index_cast %c2_i32 : i32 to index
    %c8_47 = arith.constant 8 : index
    %c0_48 = arith.constant 0 : index
    %83 = vector.load %arg7[%82, %c8_47, %c0_48] : memref<8x16x128xf32, #tpu.memory_space<vmem>>, vector<1x8x128xf32>
    %84 = vector.shape_cast %83 : vector<1x8x128xf32> to vector<8x128xf32>
    %85 = vector.shape_cast %81 : vector<8x128xf32> to vector<1x8x128xf32>
    tpu.vector_store %arg7[%82, %c8_47, %c0_48], %85 {strides = array<i32>} : memref<8x16x128xf32, #tpu.memory_space<vmem>>, vector<1x8x128xf32>,
    %c3_i32 = arith.constant 3 : i32
    %cst_49 = arith.constant dense<0.000000e+00> : vector<8x128xf32>
    %86 = tpu.matmul %70, %4, %cst_49 {dimension_numbers = #tpu.dot_dimension_numbers<[1], [0], [0], [1], [0, 0, 1, 1], [], []>} : vector<8x128xf32>, vector<128x128xf32>, vector<8x128xf32> -> vector<8x128xf32>
    %cst_50 = arith.constant dense<0.000000e+00> : vector<8x128xf32>
    %87 = tpu.matmul %81, %4, %cst_50 {dimension_numbers = #tpu.dot_dimension_numbers<[1], [0], [0], [1], [0, 0, 1, 1], [], []>} : vector<8x128xf32>, vector<128x128xf32>, vector<8x128xf32> -> vector<8x128xf32>
    %c16_i32_51 = arith.constant 16 : i32
    %88 = arith.muli %c3_i32, %c16_i32_51 : i32
    %c0_i32_52 = arith.constant 0 : i32
    %89 = arith.addi %88, %c0_i32_52 : i32
    %90 = tpu.assume_multiple %89, 8 : i32
    %91 = arith.index_cast %90 : i32 to index
    %c0_53 = arith.constant 0 : index
    %92 = vector.load %arg8[%91, %c0_53] : memref<128x128xf32, #tpu.memory_space<vmem>>, vector<8x128xf32>
    %93 = arith.addf %92, %86 : vector<8x128xf32>
    %94 = math.tanh %93 : vector<8x128xf32>
    %95 = arith.index_cast %c3_i32 : i32 to index
    %c0_54 = arith.constant 0 : index
    %c0_55 = arith.constant 0 : index
    %96 = vector.load %arg7[%95, %c0_54, %c0_55] : memref<8x16x128xf32, #tpu.memory_space<vmem>>, vector<1x8x128xf32>
    %97 = vector.shape_cast %96 : vector<1x8x128xf32> to vector<8x128xf32>
    %98 = vector.shape_cast %94 : vector<8x128xf32> to vector<1x8x128xf32>
    tpu.vector_store %arg7[%95, %c0_54, %c0_55], %98 {strides = array<i32>} : memref<8x16x128xf32, #tpu.memory_space<vmem>>, vector<1x8x128xf32>,
    %c16_i32_56 = arith.constant 16 : i32
    %99 = arith.muli %c3_i32, %c16_i32_56 : i32
    %c8_i32_57 = arith.constant 8 : i32
    %100 = arith.addi %99, %c8_i32_57 : i32
    %101 = tpu.assume_multiple %100, 8 : i32
    %102 = arith.index_cast %101 : i32 to index
    %c0_58 = arith.constant 0 : index
    %103 = vector.load %arg8[%102, %c0_58] : memref<128x128xf32, #tpu.memory_space<vmem>>, vector<8x128xf32>
    %104 = arith.addf %103, %87 : vector<8x128xf32>
    %105 = math.tanh %104 : vector<8x128xf32>
    %106 = arith.index_cast %c3_i32 : i32 to index
    %c8_59 = arith.constant 8 : index
    %c0_60 = arith.constant 0 : index
    %107 = vector.load %arg7[%106, %c8_59, %c0_60] : memref<8x16x128xf32, #tpu.memory_space<vmem>>, vector<1x8x128xf32>
    %108 = vector.shape_cast %107 : vector<1x8x128xf32> to vector<8x128xf32>
    %109 = vector.shape_cast %105 : vector<8x128xf32> to vector<1x8x128xf32>
    tpu.vector_store %arg7[%106, %c8_59, %c0_60], %109 {strides = array<i32>} : memref<8x16x128xf32, #tpu.memory_space<vmem>>, vector<1x8x128xf32>,
    %c4_i32 = arith.constant 4 : i32
    %cst_61 = arith.constant dense<0.000000e+00> : vector<8x128xf32>
    %110 = tpu.matmul %94, %4, %cst_61 {dimension_numbers = #tpu.dot_dimension_numbers<[1], [0], [0], [1], [0, 0, 1, 1], [], []>} : vector<8x128xf32>, vector<128x128xf32>, vector<8x128xf32> -> vector<8x128xf32>
    %cst_62 = arith.constant dense<0.000000e+00> : vector<8x128xf32>
    %111 = tpu.matmul %105, %4, %cst_62 {dimension_numbers = #tpu.dot_dimension_numbers<[1], [0], [0], [1], [0, 0, 1, 1], [], []>} : vector<8x128xf32>, vector<128x128xf32>, vector<8x128xf32> -> vector<8x128xf32>
    %c16_i32_63 = arith.constant 16 : i32
    %112 = arith.muli %c4_i32, %c16_i32_63 : i32
    %c0_i32_64 = arith.constant 0 : i32
    %113 = arith.addi %112, %c0_i32_64 : i32
    %114 = tpu.assume_multiple %113, 8 : i32
    %115 = arith.index_cast %114 : i32 to index
    %c0_65 = arith.constant 0 : index
    %116 = vector.load %arg8[%115, %c0_65] : memref<128x128xf32, #tpu.memory_space<vmem>>, vector<8x128xf32>
    %117 = arith.addf %116, %110 : vector<8x128xf32>
    %118 = math.tanh %117 : vector<8x128xf32>
    %119 = arith.index_cast %c4_i32 : i32 to index
    %c0_66 = arith.constant 0 : index
    %c0_67 = arith.constant 0 : index
    %120 = vector.load %arg7[%119, %c0_66, %c0_67] : memref<8x16x128xf32, #tpu.memory_space<vmem>>, vector<1x8x128xf32>
    %121 = vector.shape_cast %120 : vector<1x8x128xf32> to vector<8x128xf32>
    %122 = vector.shape_cast %118 : vector<8x128xf32> to vector<1x8x128xf32>
    tpu.vector_store %arg7[%119, %c0_66, %c0_67], %122 {strides = array<i32>} : memref<8x16x128xf32, #tpu.memory_space<vmem>>, vector<1x8x128xf32>,
    %c16_i32_68 = arith.constant 16 : i32
    %123 = arith.muli %c4_i32, %c16_i32_68 : i32
    %c8_i32_69 = arith.constant 8 : i32
    %124 = arith.addi %123, %c8_i32_69 : i32
    %125 = tpu.assume_multiple %124, 8 : i32
    %126 = arith.index_cast %125 : i32 to index
    %c0_70 = arith.constant 0 : index
    %127 = vector.load %arg8[%126, %c0_70] : memref<128x128xf32, #tpu.memory_space<vmem>>, vector<8x128xf32>
    %128 = arith.addf %127, %111 : vector<8x128xf32>
    %129 = math.tanh %128 : vector<8x128xf32>
    %130 = arith.index_cast %c4_i32 : i32 to index
    %c8_71 = arith.constant 8 : index
    %c0_72 = arith.constant 0 : index
    %131 = vector.load %arg7[%130, %c8_71, %c0_72] : memref<8x16x128xf32, #tpu.memory_space<vmem>>, vector<1x8x128xf32>
    %132 = vector.shape_cast %131 : vector<1x8x128xf32> to vector<8x128xf32>
    %133 = vector.shape_cast %129 : vector<8x128xf32> to vector<1x8x128xf32>
    tpu.vector_store %arg7[%130, %c8_71, %c0_72], %133 {strides = array<i32>} : memref<8x16x128xf32, #tpu.memory_space<vmem>>, vector<1x8x128xf32>,
    %c5_i32 = arith.constant 5 : i32
    %cst_73 = arith.constant dense<0.000000e+00> : vector<8x128xf32>
    %134 = tpu.matmul %118, %4, %cst_73 {dimension_numbers = #tpu.dot_dimension_numbers<[1], [0], [0], [1], [0, 0, 1, 1], [], []>} : vector<8x128xf32>, vector<128x128xf32>, vector<8x128xf32> -> vector<8x128xf32>
    %cst_74 = arith.constant dense<0.000000e+00> : vector<8x128xf32>
    %135 = tpu.matmul %129, %4, %cst_74 {dimension_numbers = #tpu.dot_dimension_numbers<[1], [0], [0], [1], [0, 0, 1, 1], [], []>} : vector<8x128xf32>, vector<128x128xf32>, vector<8x128xf32> -> vector<8x128xf32>
    %c16_i32_75 = arith.constant 16 : i32
    %136 = arith.muli %c5_i32, %c16_i32_75 : i32
    %c0_i32_76 = arith.constant 0 : i32
    %137 = arith.addi %136, %c0_i32_76 : i32
    %138 = tpu.assume_multiple %137, 8 : i32
    %139 = arith.index_cast %138 : i32 to index
    %c0_77 = arith.constant 0 : index
    %140 = vector.load %arg8[%139, %c0_77] : memref<128x128xf32, #tpu.memory_space<vmem>>, vector<8x128xf32>
    %141 = arith.addf %140, %134 : vector<8x128xf32>
    %142 = math.tanh %141 : vector<8x128xf32>
    %143 = arith.index_cast %c5_i32 : i32 to index
    %c0_78 = arith.constant 0 : index
    %c0_79 = arith.constant 0 : index
    %144 = vector.load %arg7[%143, %c0_78, %c0_79] : memref<8x16x128xf32, #tpu.memory_space<vmem>>, vector<1x8x128xf32>
    %145 = vector.shape_cast %144 : vector<1x8x128xf32> to vector<8x128xf32>
    %146 = vector.shape_cast %142 : vector<8x128xf32> to vector<1x8x128xf32>
    tpu.vector_store %arg7[%143, %c0_78, %c0_79], %146 {strides = array<i32>} : memref<8x16x128xf32, #tpu.memory_space<vmem>>, vector<1x8x128xf32>,
    %c16_i32_80 = arith.constant 16 : i32
    %147 = arith.muli %c5_i32, %c16_i32_80 : i32
    %c8_i32_81 = arith.constant 8 : i32
    %148 = arith.addi %147, %c8_i32_81 : i32
    %149 = tpu.assume_multiple %148, 8 : i32
    %150 = arith.index_cast %149 : i32 to index
    %c0_82 = arith.constant 0 : index
    %151 = vector.load %arg8[%150, %c0_82] : memref<128x128xf32, #tpu.memory_space<vmem>>, vector<8x128xf32>
    %152 = arith.addf %151, %135 : vector<8x128xf32>
    %153 = math.tanh %152 : vector<8x128xf32>
    %154 = arith.index_cast %c5_i32 : i32 to index
    %c8_83 = arith.constant 8 : index
    %c0_84 = arith.constant 0 : index
    %155 = vector.load %arg7[%154, %c8_83, %c0_84] : memref<8x16x128xf32, #tpu.memory_space<vmem>>, vector<1x8x128xf32>
    %156 = vector.shape_cast %155 : vector<1x8x128xf32> to vector<8x128xf32>
    %157 = vector.shape_cast %153 : vector<8x128xf32> to vector<1x8x128xf32>
    tpu.vector_store %arg7[%154, %c8_83, %c0_84], %157 {strides = array<i32>} : memref<8x16x128xf32, #tpu.memory_space<vmem>>, vector<1x8x128xf32>,
    %c6_i32 = arith.constant 6 : i32
    %cst_85 = arith.constant dense<0.000000e+00> : vector<8x128xf32>
    %158 = tpu.matmul %142, %4, %cst_85 {dimension_numbers = #tpu.dot_dimension_numbers<[1], [0], [0], [1], [0, 0, 1, 1], [], []>} : vector<8x128xf32>, vector<128x128xf32>, vector<8x128xf32> -> vector<8x128xf32>
    %cst_86 = arith.constant dense<0.000000e+00> : vector<8x128xf32>
    %159 = tpu.matmul %153, %4, %cst_86 {dimension_numbers = #tpu.dot_dimension_numbers<[1], [0], [0], [1], [0, 0, 1, 1], [], []>} : vector<8x128xf32>, vector<128x128xf32>, vector<8x128xf32> -> vector<8x128xf32>
    %c16_i32_87 = arith.constant 16 : i32
    %160 = arith.muli %c6_i32, %c16_i32_87 : i32
    %c0_i32_88 = arith.constant 0 : i32
    %161 = arith.addi %160, %c0_i32_88 : i32
    %162 = tpu.assume_multiple %161, 8 : i32
    %163 = arith.index_cast %162 : i32 to index
    %c0_89 = arith.constant 0 : index
    %164 = vector.load %arg8[%163, %c0_89] : memref<128x128xf32, #tpu.memory_space<vmem>>, vector<8x128xf32>
    %165 = arith.addf %164, %158 : vector<8x128xf32>
    %166 = math.tanh %165 : vector<8x128xf32>
    %167 = arith.index_cast %c6_i32 : i32 to index
    %c0_90 = arith.constant 0 : index
    %c0_91 = arith.constant 0 : index
    %168 = vector.load %arg7[%167, %c0_90, %c0_91] : memref<8x16x128xf32, #tpu.memory_space<vmem>>, vector<1x8x128xf32>
    %169 = vector.shape_cast %168 : vector<1x8x128xf32> to vector<8x128xf32>
    %170 = vector.shape_cast %166 : vector<8x128xf32> to vector<1x8x128xf32>
    tpu.vector_store %arg7[%167, %c0_90, %c0_91], %170 {strides = array<i32>} : memref<8x16x128xf32, #tpu.memory_space<vmem>>, vector<1x8x128xf32>,
    %c16_i32_92 = arith.constant 16 : i32
    %171 = arith.muli %c6_i32, %c16_i32_92 : i32
    %c8_i32_93 = arith.constant 8 : i32
    %172 = arith.addi %171, %c8_i32_93 : i32
    %173 = tpu.assume_multiple %172, 8 : i32
    %174 = arith.index_cast %173 : i32 to index
    %c0_94 = arith.constant 0 : index
    %175 = vector.load %arg8[%174, %c0_94] : memref<128x128xf32, #tpu.memory_space<vmem>>, vector<8x128xf32>
    %176 = arith.addf %175, %159 : vector<8x128xf32>
    %177 = math.tanh %176 : vector<8x128xf32>
    %178 = arith.index_cast %c6_i32 : i32 to index
    %c8_95 = arith.constant 8 : index
    %c0_96 = arith.constant 0 : index
    %179 = vector.load %arg7[%178, %c8_95, %c0_96] : memref<8x16x128xf32, #tpu.memory_space<vmem>>, vector<1x8x128xf32>
    %180 = vector.shape_cast %179 : vector<1x8x128xf32> to vector<8x128xf32>
    %181 = vector.shape_cast %177 : vector<8x128xf32> to vector<1x8x128xf32>
    tpu.vector_store %arg7[%178, %c8_95, %c0_96], %181 {strides = array<i32>} : memref<8x16x128xf32, #tpu.memory_space<vmem>>, vector<1x8x128xf32>,
    %c7_i32 = arith.constant 7 : i32
    %cst_97 = arith.constant dense<0.000000e+00> : vector<8x128xf32>
    %182 = tpu.matmul %166, %4, %cst_97 {dimension_numbers = #tpu.dot_dimension_numbers<[1], [0], [0], [1], [0, 0, 1, 1], [], []>} : vector<8x128xf32>, vector<128x128xf32>, vector<8x128xf32> -> vector<8x128xf32>
    %cst_98 = arith.constant dense<0.000000e+00> : vector<8x128xf32>
    %183 = tpu.matmul %177, %4, %cst_98 {dimension_numbers = #tpu.dot_dimension_numbers<[1], [0], [0], [1], [0, 0, 1, 1], [], []>} : vector<8x128xf32>, vector<128x128xf32>, vector<8x128xf32> -> vector<8x128xf32>
    %c16_i32_99 = arith.constant 16 : i32
    %184 = arith.muli %c7_i32, %c16_i32_99 : i32
    %c0_i32_100 = arith.constant 0 : i32
    %185 = arith.addi %184, %c0_i32_100 : i32
    %186 = tpu.assume_multiple %185, 8 : i32
    %187 = arith.index_cast %186 : i32 to index
    %c0_101 = arith.constant 0 : index
    %188 = vector.load %arg8[%187, %c0_101] : memref<128x128xf32, #tpu.memory_space<vmem>>, vector<8x128xf32>
    %189 = arith.addf %188, %182 : vector<8x128xf32>
    %190 = math.tanh %189 : vector<8x128xf32>
    %191 = arith.index_cast %c7_i32 : i32 to index
    %c0_102 = arith.constant 0 : index
    %c0_103 = arith.constant 0 : index
    %192 = vector.load %arg7[%191, %c0_102, %c0_103] : memref<8x16x128xf32, #tpu.memory_space<vmem>>, vector<1x8x128xf32>
    %193 = vector.shape_cast %192 : vector<1x8x128xf32> to vector<8x128xf32>
    %194 = vector.shape_cast %190 : vector<8x128xf32> to vector<1x8x128xf32>
    tpu.vector_store %arg7[%191, %c0_102, %c0_103], %194 {strides = array<i32>} : memref<8x16x128xf32, #tpu.memory_space<vmem>>, vector<1x8x128xf32>,
    %c16_i32_104 = arith.constant 16 : i32
    %195 = arith.muli %c7_i32, %c16_i32_104 : i32
    %c8_i32_105 = arith.constant 8 : i32
    %196 = arith.addi %195, %c8_i32_105 : i32
    %197 = tpu.assume_multiple %196, 8 : i32
    %198 = arith.index_cast %197 : i32 to index
    %c0_106 = arith.constant 0 : index
    %199 = vector.load %arg8[%198, %c0_106] : memref<128x128xf32, #tpu.memory_space<vmem>>, vector<8x128xf32>
    %200 = arith.addf %199, %183 : vector<8x128xf32>
    %201 = math.tanh %200 : vector<8x128xf32>
    %202 = arith.index_cast %c7_i32 : i32 to index
    %c8_107 = arith.constant 8 : index
    %c0_108 = arith.constant 0 : index
    %203 = vector.load %arg7[%202, %c8_107, %c0_108] : memref<8x16x128xf32, #tpu.memory_space<vmem>>, vector<1x8x128xf32>
    %204 = vector.shape_cast %203 : vector<1x8x128xf32> to vector<8x128xf32>
    %205 = vector.shape_cast %201 : vector<8x128xf32> to vector<1x8x128xf32>
    tpu.vector_store %arg7[%202, %c8_107, %c0_108], %205 {strides = array<i32>} : memref<8x16x128xf32, #tpu.memory_space<vmem>>, vector<1x8x128xf32>,
    %c8_i32_109 = arith.constant 8 : i32
    %c0_110 = arith.constant 0 : index
    %c0_111 = arith.constant 0 : index
    %206 = vector.load %arg9[%c0_110, %c0_111] : memref<16x128xf32, #tpu.memory_space<vmem>>, vector<8x128xf32>
    tpu.vector_store %arg9[%c0_110, %c0_111], %190 {strides = array<i32>} : memref<16x128xf32, #tpu.memory_space<vmem>>, vector<8x128xf32>,
    %c8_112 = arith.constant 8 : index
    %c0_113 = arith.constant 0 : index
    %207 = vector.load %arg9[%c8_112, %c0_113] : memref<16x128xf32, #tpu.memory_space<vmem>>, vector<8x128xf32>
    tpu.vector_store %arg9[%c8_112, %c0_113], %201 {strides = array<i32>} : memref<16x128xf32, #tpu.memory_space<vmem>>, vector<8x128xf32>,
    return
  }
  func.func @transform_0(%arg0: i32, %arg1: i32) -> (i32, i32, i32) {
    %c0_i32 = arith.constant 0 : i32
    %c0_i32_0 = arith.constant 0 : i32
    return %arg1, %arg0, %c0_i32 : i32, i32, i32
  }
  func.func @transform_1(%arg0: i32, %arg1: i32) -> (i32, i32) {
    %c0_i32 = arith.constant 0 : i32
    %c0_i32_0 = arith.constant 0 : i32
    return %arg0, %c0_i32 : i32, i32
  }
  func.func @transform_2(%arg0: i32, %arg1: i32) -> (i32, i32) {
    %c0_i32 = arith.constant 0 : i32
    %c0_i32_0 = arith.constant 0 : i32
    %c0_i32_1 = arith.constant 0 : i32
    return %c0_i32, %c0_i32_0 : i32, i32
  }
  func.func @transform_3(%arg0: i32, %arg1: i32) -> (i32, i32) {
    %c0_i32 = arith.constant 0 : i32
    %c0_i32_0 = arith.constant 0 : i32
    %c0_i32_1 = arith.constant 0 : i32
    return %c0_i32, %c0_i32_0 : i32, i32
  }
  func.func @transform_4(%arg0: i32, %arg1: i32) -> (i32, i32) {
    %c0_i32 = arith.constant 0 : i32
    %c0_i32_0 = arith.constant 0 : i32
    %c0_i32_1 = arith.constant 0 : i32
    return %c0_i32, %c0_i32_0 : i32, i32
  }
  func.func @transform_5(%arg0: i32, %arg1: i32) -> (i32, i32, i32) {
    %c0_i32 = arith.constant 0 : i32
    %c0_i32_0 = arith.constant 0 : i32
    return %arg1, %arg0, %c0_i32 : i32, i32, i32
  }
}

</mosaic_0001>

<bundles_post_ra>
// kernel: rnn_forward.1
= control target key start
LH: loop header
LB: loop body
LE: loop exit
PB: predicated region body
PF: predicated region fallthrough
CT: control target
= control target key end

     0   :  { %vm69_vm0 = vcmask 130048   ;;  %v2825_v0 = vmov 0.0|0.0   ;;  %vm2826_vm1 = vmmov 0   ;;  %v2827_v4 = vmov 0.0   ;;  %s3379_s2 = inlined_call_operand.vmem [shape: f32[16,128], index: 2, kind: input, shape index: {}]   ;;  %s3380_s3 = inlined_call_operand.vmem [shape: f32[128,128], index: 3, kind: input, shape index: {}]   ;;  %s3381_s0 = inlined_call_operand.vmem [shape: f32[8,16,16], index: 0, kind: input, shape index: {}]   ;;  %s3382_s1 = inlined_call_operand.vmem [shape: f32[16,128], index: 1, kind: input, shape index: {}]   ;;  %s3383_s4 = inlined_call_operand.vmem [shape: f32[1,128], index: 4, kind: input, shape index: {}]   ;;  %s3384_s5 = inlined_call_operand.vmem [shape: f32[8,16,128], index: 5, kind: output, shape index: {}]  }
   0x1   :  { %2406 = vmatprep.subr.bf16.mxu1 %v2825_v0  ;;  %v28_v1 = vld [vmem:[%s3379_s2] sm:$0xff]  ;;  %v29_v2 = vld [vmem:[%s3379_s2 + $0x8] sm:$0xff]  ;;  %1874 = vmatprep.mubr.msk.f32.mxu1 %vm2826_vm1, %v2827_v4  ;;  %v32_v9 = vld [vmem:[%s3380_s3 + $0x10] sm:$0xff] }
   0x2   :  { %v30_v3 = vld [vmem:[%s3380_s3] sm:$0xff]  ;;  %v2402_v5 = vpack.c.bf16 %v29_v2, %v28_v1  ;;  %v31_v6 = vld [vmem:[%s3380_s3 + $0x8] sm:$0xff]  ;;  %v33_v10 = vld [vmem:[%s3380_s3 + $0x18] sm:$0xff] }
   0x3   :  { %v47_v7 = vld [vmem:[%s3381_s0] sm:$0xff]  ;;  %v2876_v8 = vpack.c.bf16 %v31_v6, %v30_v3  ;;  %v48_v11 = vld [vmem:[%s3381_s0 + $0x8] sm:$0xff]  ;;  %v2889_v12 = vpack.c.bf16 %v33_v10, %v32_v9  ;;  %v49_v15 = vld [vmem:[%s3381_s0 + $0x10] sm:$0xff] }
   0x4   :  { %1818 = vmatprep.mubr.msk.f32.mxu0 %vm69_vm0, %v47_v7  ;;  %2403 = vmatprep.subr.bf16.mxu0 %v2402_v5  ;;  %v34_v13 = vld [vmem:[%s3380_s3 + $0x20] sm:$0xff]  ;;  %v35_v14 = vld [vmem:[%s3380_s3 + $0x28] sm:$0xff]  ;;  %v50_v16 = vld [vmem:[%s3381_s0 + $0x18] sm:$0xff] }
   0x5   :  { %2408 = vmatpush3.bf16.msra.mxu1 %v2876_v8  ;;  %2405 = vmatpush3.bf16.msra.mxu0 %v2402_v5  ;;  %v2908_v17 = vpack.c.bf16 %v35_v14, %v34_v13  ;;  %v36_v18 = vld [vmem:[%s3380_s3 + $0x30] sm:$0xff]  ;;  %v37_v19 = vld [vmem:[%s3380_s3 + $0x38] sm:$0xff]  ;;  %v51_v20 = vld [vmem:[%s3381_s0 + $0x20] sm:$0xff] }
   0x6   :  { %2409 = vmatprep.subr.bf16.mxu1 %v2825_v0  ;;  %2430 = vmatprep.subr.bf16.mxu0 %v2825_v0  ;;  %v52_v21 = vld [vmem:[%s3381_s0 + $0x28] sm:$0xff]  ;;  %v2928_v22 = vpack.c.bf16 %v37_v19, %v36_v18  ;;  %v38_v23 = vld [vmem:[%s3380_s3 + $0x40] sm:$0xff]  ;;  %v53_v25 = vld [vmem:[%s3381_s0 + $0x30] sm:$0xff] }
   0x7   :  { %v39_v24 = vld [vmem:[%s3380_s3 + $0x48] sm:$0xff]  ;;  %v54_v26 = vld [vmem:[%s3381_s0 + $0x38] sm:$0xff]  ;;  %v40_v28 = vld [vmem:[%s3380_s3 + $0x50] sm:$0xff] }
   0x8   :  { %1819 = vmatmul.mubr.msk.f32.vlgmr.msra.gmra.mrb[0].mxu0 %vm69_vm0, %v48_v11  ;;  %v2948_v27 = vpack.c.bf16 %v39_v24, %v38_v23  ;;  %v41_v29 = vld [vmem:[%s3380_s3 + $0x58] sm:$0xff]  ;;  %v55_v30 = vld [vmem:[%s3381_s0 + $0x40] sm:$0xff]  ;;  %v56_v31 = vld [vmem:[%s3381_s0 + $0x48] sm:$0xff] }
   0x9   :  { %2411 = vmatpush3.bf16.msra.mxu1 %v2889_v12  ;;  %2432 = vmatpush3.bf16.msra.mxu0 %v2876_v8  ;;  %v2968_v32 = vpack.c.bf16 %v41_v29, %v40_v28  ;;  %v42_v33 = vld [vmem:[%s3380_s3 + $0x60] sm:$0xff]  ;;  %v43_v34 = vld [vmem:[%s3380_s3 + $0x68] sm:$0xff]  ;;  %v57_v35 = vld [vmem:[%s3381_s0 + $0x50] sm:$0xff] }
   0xa   :  { %1821 = vmatprep.mubr.msk.f32.mxu0 %vm69_vm0, %v49_v15  ;;  %2412 = vmatprep.subr.bf16.mxu1 %v2825_v0  ;;  %v58_v36 = vld [vmem:[%s3381_s0 + $0x58] sm:$0xff]  ;;  %v2988_v37 = vpack.c.bf16 %v43_v34, %v42_v33  ;;  %v44_v38 = vld [vmem:[%s3380_s3 + $0x70] sm:$0xff]  ;;  %v59_v40 = vld [vmem:[%s3381_s0 + $0x60] sm:$0xff] }
   0xb   :  { %2433 = vmatprep.subr.bf16.mxu0 %v2825_v0  ;;  %v45_v39 = vld [vmem:[%s3380_s3 + $0x78] sm:$0xff]  ;;  %v60_v41 = vld [vmem:[%s3381_s0 + $0x68] sm:$0xff]  ;;  %v61_v43 = vld [vmem:[%s3381_s0 + $0x70] sm:$0xff] }
   0xc   :  { %1822 = vmatmul.mubr.msk.f32.gmra.mrb[2].mxu0 %vm69_vm0, %v50_v16  ;;  %v3008_v42 = vpack.c.bf16 %v45_v39, %v44_v38  ;;  %v24_v44 = vld [vmem:[%s3382_s1] sm:$0xff]  ;;  %v62_v45 = vld [vmem:[%s3381_s0 + $0x78] sm:$0xff]  ;;  %v25_v46 = vld [vmem:[%s3382_s1 + $0x8] sm:$0xff] }
   0xd   :  { %2414 = vmatpush3.bf16.msra.mxu1 %v2908_v17  ;;  %2435 = vmatpush3.bf16.msra.mxu0 %v2889_v12  ;;  %v1493_v49 = vld [vmem:[%s3383_s4] ss:$0 sm:$0xff] }
   0xe   :  { %1824 = vmatprep.mubr.msk.f32.mxu0 %vm69_vm0, %v51_v20  ;;  %2415 = vmatprep.subr.bf16.mxu1 %v2825_v0 }
   0xf   :  { %2436 = vmatprep.subr.bf16.mxu0 %v2825_v0 }
  0x10   :  { %1825 = vmatmul.mubr.msk.f32.gmra.mrb[4].mxu0 %vm69_vm0, %v52_v21 }
  0x11   :  { %2417 = vmatpush3.bf16.msra.mxu1 %v2928_v22  ;;  %2438 = vmatpush3.bf16.msra.mxu0 %v2908_v17 }
  0x12   :  { %1827 = vmatprep.mubr.msk.f32.mxu0 %vm69_vm0, %v53_v25  ;;  %2418 = vmatprep.subr.bf16.mxu1 %v2825_v0 }
  0x13   :  { %2439 = vmatprep.subr.bf16.mxu0 %v2825_v0 }
  0x14   :  { %1828 = vmatmul.mubr.msk.f32.gmra.mrb[6].mxu0 %vm69_vm0, %v54_v26 }
  0x15   :  { %2420 = vmatpush3.bf16.msra.mxu1 %v2948_v27  ;;  %2441 = vmatpush3.bf16.msra.mxu0 %v2928_v22 }
  0x16   :  { %1830 = vmatprep.mubr.msk.f32.mxu0 %vm69_vm0, %v55_v30  ;;  %2421 = vmatprep.subr.bf16.mxu1 %v2825_v0 }
  0x17   :  { %2442 = vmatprep.subr.bf16.mxu0 %v2825_v0 }
  0x18   :  { %1831 = vmatmul.mubr.msk.f32.gmra.mrb[8].mxu0 %vm69_vm0, %v56_v31 }
  0x19   :  { %2423 = vmatpush3.bf16.msra.mxu1 %v2968_v32  ;;  %2444 = vmatpush3.bf16.msra.mxu0 %v2948_v27 }
  0x1a   :  { %1833 = vmatprep.mubr.msk.f32.mxu0 %vm69_vm0, %v57_v35  ;;  %2424 = vmatprep.subr.bf16.mxu1 %v2825_v0 }
  0x1b   :  { %2445 = vmatprep.subr.bf16.mxu0 %v2825_v0 }
  0x1c   :  { %1834 = vmatmul.mubr.msk.f32.gmra.mrb[10].mxu0 %vm69_vm0, %v58_v36 }
  0x1d   :  { %2426 = vmatpush3.bf16.msra.mxu1 %v2988_v37  ;;  %2447 = vmatpush3.bf16.msra.mxu0 %v2968_v32 }
  0x1e   :  { %1836 = vmatprep.mubr.msk.f32.mxu0 %vm69_vm0, %v59_v40  ;;  %2427 = vmatprep.subr.bf16.mxu1 %v2825_v0 }
  0x1f   :  { %2448 = vmatprep.subr.bf16.mxu0 %v2825_v0 }
  0x20   :  { %1837 = vmatmul.mubr.msk.f32.gmra.mrb[12].mxu0 %vm69_vm0, %v60_v41 }
  0x21   :  { %2429 = vmatpush3.bf16.msra.mxu1 %v3008_v42  ;;  %2450 = vmatpush3.bf16.msra.mxu0 %v2988_v37 }
  0x22   :  { %1839 = vmatprep.mubr.msk.f32.mxu0 %vm69_vm0, %v61_v43  ;;  %2451 = vmatprep.subr.bf16.mxu0 %v2825_v0 }
  0x23   :  { %2454 = vmatprep.subr.bf16.mxu1 %v2825_v0 }
  0x24   :  { %1875 = vmatmul.mubr.f32.vlgmr.msra.gmra.mrb[0].mxu1 %v24_v44  ;;  %1840 = vmatmul.mubr.msk.f32.gmra.mrb[14].mxu0 %vm69_vm0, %v62_v45 }
  0x25   :  { %2453 = vmatpush3.bf16.msra.mxu0 %v3008_v42  ;;  %1909 = vmatprep.mubr.msk.f32.mxu0 %vm2826_vm1, %v2827_v4 }
  0x26   :  { %2456 = vmatpush3.bf16.msra.mxu1 %v2876_v8  ;;  %2478 = vmatprep.subr.bf16.mxu0 %v2825_v0 }
  0x27   :  { %2457 = vmatprep.subr.bf16.mxu1 %v2825_v0  ;;  %1944 = vmatprep.mubr.msk.f32.mxu1 %vm2826_vm1, %v2827_v4 }
  0x28   :  { %1910 = vmatmul.mubr.f32.vlgmr.msra.gmra.mrb[16].mxu0 %v25_v46 }
  0x29   :  { %2480 = vmatpush3.bf16.msra.mxu0 %v2876_v8  ;;  %1979 = vmatprep.mubr.msk.f32.mxu0 %vm2826_vm1, %v2827_v4 }
  0x2a   :  { %2459 = vmatpush3.bf16.msra.mxu1 %v2889_v12  ;;  %2481 = vmatprep.subr.bf16.mxu0 %v2825_v0 }
  0x2b   :  { %2460 = vmatprep.subr.bf16.mxu1 %v2825_v0 }
  0x2d   :  { %2483 = vmatpush3.bf16.msra.mxu0 %v2889_v12 }
  0x2e   :  { %2462 = vmatpush3.bf16.msra.mxu1 %v2908_v17  ;;  %2484 = vmatprep.subr.bf16.mxu0 %v2825_v0 }
  0x2f   :  { %2463 = vmatprep.subr.bf16.mxu1 %v2825_v0 }
  0x31   :  { %2486 = vmatpush3.bf16.msra.mxu0 %v2908_v17 }
  0x32   :  { %2465 = vmatpush3.bf16.msra.mxu1 %v2928_v22  ;;  %2487 = vmatprep.subr.bf16.mxu0 %v2825_v0 }
  0x33   :  { %2466 = vmatprep.subr.bf16.mxu1 %v2825_v0 }
  0x35   :  { %2489 = vmatpush3.bf16.msra.mxu0 %v2928_v22 }
  0x36   :  { %2468 = vmatpush3.bf16.msra.mxu1 %v2948_v27  ;;  %2490 = vmatprep.subr.bf16.mxu0 %v2825_v0 }
  0x37   :  { %2469 = vmatprep.subr.bf16.mxu1 %v2825_v0 }
  0x39   :  { %2492 = vmatpush3.bf16.msra.mxu0 %v2948_v27 }
  0x3a   :  { %2471 = vmatpush3.bf16.msra.mxu1 %v2968_v32  ;;  %2493 = vmatprep.subr.bf16.mxu0 %v2825_v0 }
  0x3b   :  { %2472 = vmatprep.subr.bf16.mxu1 %v2825_v0 }
  0x3d   :  { %2495 = vmatpush3.bf16.msra.mxu0 %v2968_v32 }
  0x3e   :  { %2474 = vmatpush3.bf16.msra.mxu1 %v2988_v37  ;;  %2496 = vmatprep.subr.bf16.mxu0 %v2825_v0 }
  0x3f   :  { %2475 = vmatprep.subr.bf16.mxu1 %v2825_v0 }
  0x41   :  { %2498 = vmatpush3.bf16.msra.mxu0 %v2988_v37 }
  0x42   :  { %2477 = vmatpush3.bf16.msra.mxu1 %v3008_v42  ;;  %2499 = vmatprep.subr.bf16.mxu0 %v2825_v0 }
  0x43   :  { %2502 = vmatprep.subr.bf16.mxu1 %v2825_v0 }
  0x45   :  { %2501 = vmatpush3.bf16.msra.mxu0 %v3008_v42 }
  0x46   :  { %2526 = vmatprep.subr.bf16.mxu0 %v2825_v0 }
  0xdb   :  { %v1820_v47 = vpop.f32.mrb[0].mxu0 }
  0xdc   :  { %v184_v48 = vpop.f32.mrb[1].mxu0  ;;  %v190_v24 = vadd.f32 %v1820_v47, %v1493_v49 }
  0xdd   :  { %v185_v14 = vadd.f32 %v1493_v49, %v184_v48 }
  0xdf   :  { %v1823_v50 = vpop.f32.mrb[2].mxu0 }
  0xe0   :  { %v3075_v51 = vadd.f32 %v1823_v50, %v1493_v49  ;;  %v194_v52 = vpop.f32.mrb[3].mxu0 }
  0xe1   :  { %v3077_v53 = vadd.f32 %v1493_v49, %v194_v52 }
  0xe3   :  { %v1826_v54 = vpop.f32.mrb[4].mxu0 }
  0xe4   :  { %v3079_v55 = vadd.f32 %v1826_v54, %v1493_v49  ;;  %v204_v56 = vpop.f32.mrb[5].mxu0 }
  0xe5   :  { %v3081_v57 = vadd.f32 %v1493_v49, %v204_v56 }
  0xe7   :  { %v1829_v58 = vpop.f32.mrb[6].mxu0 }
  0xe8   :  { %v3083_v59 = vadd.f32 %v1829_v58, %v1493_v49  ;;  %v214_v60 = vpop.f32.mrb[7].mxu0 }
  0xe9   :  { %v3085_v61 = vadd.f32 %v1493_v49, %v214_v60 }
  0xeb   :  { %v1832_v62 = vpop.f32.mrb[8].mxu0 }
  0xec   :  { %v3087_v63 = vadd.f32 %v1832_v62, %v1493_v49  ;;  %v224_v1 = vpop.f32.mrb[9].mxu0 }
  0xed   :  { %v3089_v2 = vadd.f32 %v1493_v49, %v224_v1 }
  0xef   :  { %v1835_v3 = vpop.f32.mrb[10].mxu0 }
  0xf0   :  { %v3091_v5 = vadd.f32 %v1835_v3, %v1493_v49  ;;  %v234_v6 = vpop.f32.mrb[11].mxu0 }
  0xf1   :  { %v3093_v7 = vadd.f32 %v1493_v49, %v234_v6 }
  0xf3   :  { %v1838_v9 = vpop.f32.mrb[12].mxu0 }
  0xf4   :  { %v3095_v10 = vadd.f32 %v1838_v9, %v1493_v49  ;;  %v244_v11 = vpop.f32.mrb[13].mxu0 }
  0xf5   :  { %v3097_v13 = vadd.f32 %v1493_v49, %v244_v11 }
  0xf7   :  { %v347_v15 = vpop.f32.mrb[0].mxu1  ;;  %v1841_v16 = vpop.f32.mrb[14].mxu0 }
  0xf8   :  { %v422_v18 = vadd.f32 %v347_v15, %v185_v14  ;;  %v3099_v19 = vadd.f32 %v1841_v16, %v1493_v49  ;;  %v254_v20 = vpop.f32.mrb[15].mxu0  ;;  %v1876_v21 = vpop.f32.mrb[1].mxu1 }
  0xf9   :  { %v3101_v23 = vadd.f32 %v1493_v49, %v254_v20 }
  0xfa   :  { %2793 = vtanh.f32 %v422_v18 }
  0xfb   :  { %v417_v25 = vpop.f32.mrb[16].mxu0 }
  0xfc   :  { %v427_v26 = vadd.f32 %v417_v25, %v190_v24  ;;  %v1911_v28 = vpop.f32.mrb[17].mxu0 }
  0xfe   :  { %2795 = vtanh.f32 %v427_v26 }
 0x104   :  { %v2794_v29 = vpop.eup %2793 }
 0x105   :  { %424 = vst [vmem:[%s3384_s5] sm:$0xff] %v2794_v29  ;;  %1945 = vmatmul.mubr.f32.vlgmr.msra.gmra.mrb[2].mxu1 %v2794_v29 }
 0x106   :  { %2504 = vmatpush3.bf16.msra.mxu1 %v2876_v8  ;;  %2014 = vmatprep.mubr.msk.f32.mxu1 %vm2826_vm1, %v2827_v4 }
 0x107   :  { %2505 = vmatprep.subr.bf16.mxu1 %v2825_v0 }
 0x108   :  { %v2796_v30 = vpop.eup %2795 }
 0x109   :  { %429 = vst [vmem:[%s3384_s5 + $0x8] sm:$0xff] %v2796_v30  ;;  %1980 = vmatmul.mubr.f32.vlgmr.msra.gmra.mrb[18].mxu0 %v2796_v30 }
 0x10a   :  { %2507 = vmatpush3.bf16.msra.mxu1 %v2889_v12  ;;  %2528 = vmatpush3.bf16.msra.mxu0 %v2876_v8 }
 0x10b   :  { %2508 = vmatprep.subr.bf16.mxu1 %v2825_v0  ;;  %2529 = vmatprep.subr.bf16.mxu0 %v2825_v0 }
 0x10c   :  { %2049 = vmatprep.mubr.msk.f32.mxu0 %vm2826_vm1, %v2827_v4 }
 0x10e   :  { %2510 = vmatpush3.bf16.msra.mxu1 %v2908_v17  ;;  %2531 = vmatpush3.bf16.msra.mxu0 %v2889_v12 }
 0x10f   :  { %2511 = vmatprep.subr.bf16.mxu1 %v2825_v0  ;;  %2532 = vmatprep.subr.bf16.mxu0 %v2825_v0 }
 0x112   :  { %2513 = vmatpush3.bf16.msra.mxu1 %v2928_v22  ;;  %2534 = vmatpush3.bf16.msra.mxu0 %v2908_v17 }
 0x113   :  { %2514 = vmatprep.subr.bf16.mxu1 %v2825_v0  ;;  %2535 = vmatprep.subr.bf16.mxu0 %v2825_v0 }
 0x116   :  { %2516 = vmatpush3.bf16.msra.mxu1 %v2948_v27  ;;  %2537 = vmatpush3.bf16.msra.mxu0 %v2928_v22 }
 0x117   :  { %2517 = vmatprep.subr.bf16.mxu1 %v2825_v0  ;;  %2538 = vmatprep.subr.bf16.mxu0 %v2825_v0 }
 0x11a   :  { %2519 = vmatpush3.bf16.msra.mxu1 %v2968_v32  ;;  %2540 = vmatpush3.bf16.msra.mxu0 %v2948_v27 }
 0x11b   :  { %2520 = vmatprep.subr.bf16.mxu1 %v2825_v0  ;;  %2541 = vmatprep.subr.bf16.mxu0 %v2825_v0 }
 0x11e   :  { %2522 = vmatpush3.bf16.msra.mxu1 %v2988_v37  ;;  %2543 = vmatpush3.bf16.msra.mxu0 %v2968_v32 }
 0x11f   :  { %2523 = vmatprep.subr.bf16.mxu1 %v2825_v0  ;;  %2544 = vmatprep.subr.bf16.mxu0 %v2825_v0 }
 0x122   :  { %2525 = vmatpush3.bf16.msra.mxu1 %v3008_v42  ;;  %2546 = vmatpush3.bf16.msra.mxu0 %v2988_v37 }
 0x123   :  { %2547 = vmatprep.subr.bf16.mxu0 %v2825_v0  ;;  %2550 = vmatprep.subr.bf16.mxu1 %v2825_v0 }
 0x126   :  { %2549 = vmatpush3.bf16.msra.mxu0 %v3008_v42 }
 0x127   :  { %2574 = vmatprep.subr.bf16.mxu0 %v2825_v0 }
 0x1d8   :  { %v496_v31 = vpop.f32.mrb[2].mxu1 }
 0x1d9   :  { %v572_v33 = vadd.f32 %v496_v31, %v3077_v53  ;;  %v1946_v34 = vpop.f32.mrb[3].mxu1 }
 0x1db   :  { %2797 = vtanh.f32 %v572_v33 }
 0x1dc   :  { %v566_v35 = vpop.f32.mrb[18].mxu0 }
 0x1dd   :  { %v578_v36 = vadd.f32 %v566_v35, %v3075_v51  ;;  %v1981_v38 = vpop.f32.mrb[19].mxu0 }
 0x1df   :  { %2799 = vtanh.f32 %v578_v36 }
 0x1e5   :  { %v2798_v39 = vpop.eup %2797 }
 0x1e6   :  { %1510 = vst [vmem:[%s3384_s5 + $0x10] sm:$0xff] %v2798_v39  ;;  %2015 = vmatmul.mubr.f32.vlgmr.msra.gmra.mrb[4].mxu1 %v2798_v39 }
 0x1e7   :  { %2552 = vmatpush3.bf16.msra.mxu1 %v2876_v8  ;;  %2084 = vmatprep.mubr.msk.f32.mxu1 %vm2826_vm1, %v2827_v4 }
 0x1e8   :  { %2553 = vmatprep.subr.bf16.mxu1 %v2825_v0 }
 0x1e9   :  { %v2800_v40 = vpop.eup %2799 }
 0x1ea   :  { %1511 = vst [vmem:[%s3384_s5 + $0x18] sm:$0xff] %v2800_v40  ;;  %2050 = vmatmul.mubr.f32.vlgmr.msra.gmra.mrb[20].mxu0 %v2800_v40 }
 0x1eb   :  { %2555 = vmatpush3.bf16.msra.mxu1 %v2889_v12  ;;  %2576 = vmatpush3.bf16.msra.mxu0 %v2876_v8 }
 0x1ec   :  { %2556 = vmatprep.subr.bf16.mxu1 %v2825_v0  ;;  %2577 = vmatprep.subr.bf16.mxu0 %v2825_v0 }
 0x1ed   :  { %2119 = vmatprep.mubr.msk.f32.mxu0 %vm2826_vm1, %v2827_v4 }
 0x1ef   :  { %2558 = vmatpush3.bf16.msra.mxu1 %v2908_v17  ;;  %2579 = vmatpush3.bf16.msra.mxu0 %v2889_v12 }
 0x1f0   :  { %2559 = vmatprep.subr.bf16.mxu1 %v2825_v0  ;;  %2580 = vmatprep.subr.bf16.mxu0 %v2825_v0 }
 0x1f3   :  { %2561 = vmatpush3.bf16.msra.mxu1 %v2928_v22  ;;  %2582 = vmatpush3.bf16.msra.mxu0 %v2908_v17 }
 0x1f4   :  { %2562 = vmatprep.subr.bf16.mxu1 %v2825_v0  ;;  %2583 = vmatprep.subr.bf16.mxu0 %v2825_v0 }
 0x1f7   :  { %2564 = vmatpush3.bf16.msra.mxu1 %v2948_v27  ;;  %2585 = vmatpush3.bf16.msra.mxu0 %v2928_v22 }
 0x1f8   :  { %2565 = vmatprep.subr.bf16.mxu1 %v2825_v0  ;;  %2586 = vmatprep.subr.bf16.mxu0 %v2825_v0 }
 0x1fb   :  { %2567 = vmatpush3.bf16.msra.mxu1 %v2968_v32  ;;  %2588 = vmatpush3.bf16.msra.mxu0 %v2948_v27 }
 0x1fc   :  { %2568 = vmatprep.subr.bf16.mxu1 %v2825_v0  ;;  %2589 = vmatprep.subr.bf16.mxu0 %v2825_v0 }
 0x1ff   :  { %2570 = vmatpush3.bf16.msra.mxu1 %v2988_v37  ;;  %2591 = vmatpush3.bf16.msra.mxu0 %v2968_v32 }
 0x200   :  { %2571 = vmatprep.subr.bf16.mxu1 %v2825_v0  ;;  %2592 = vmatprep.subr.bf16.mxu0 %v2825_v0 }
 0x203   :  { %2573 = vmatpush3.bf16.msra.mxu1 %v3008_v42  ;;  %2594 = vmatpush3.bf16.msra.mxu0 %v2988_v37 }
 0x204   :  { %2595 = vmatprep.subr.bf16.mxu0 %v2825_v0  ;;  %2598 = vmatprep.subr.bf16.mxu1 %v2825_v0 }
 0x207   :  { %2597 = vmatpush3.bf16.msra.mxu0 %v3008_v42 }
 0x208   :  { %2622 = vmatprep.subr.bf16.mxu0 %v2825_v0 }
 0x2b9   :  { %v647_v41 = vpop.f32.mrb[4].mxu1 }
 0x2ba   :  { %v723_v43 = vadd.f32 %v647_v41, %v3081_v57  ;;  %v2016_v44 = vpop.f32.mrb[5].mxu1 }
 0x2bc   :  { %2801 = vtanh.f32 %v723_v43 }
 0x2bd   :  { %v717_v45 = vpop.f32.mrb[20].mxu0 }
 0x2be   :  { %v729_v46 = vadd.f32 %v717_v45, %v3079_v55  ;;  %v2051_v47 = vpop.f32.mrb[21].mxu0 }
 0x2c0   :  { %2803 = vtanh.f32 %v729_v46 }
 0x2c6   :  { %v2802_v48 = vpop.eup %2801 }
 0x2c7   :  { %1512 = vst [vmem:[%s3384_s5 + $0x20] sm:$0xff] %v2802_v48  ;;  %2085 = vmatmul.mubr.f32.vlgmr.msra.gmra.mrb[6].mxu1 %v2802_v48 }
 0x2c8   :  { %2600 = vmatpush3.bf16.msra.mxu1 %v2876_v8  ;;  %2154 = vmatprep.mubr.msk.f32.mxu1 %vm2826_vm1, %v2827_v4 }
 0x2c9   :  { %2601 = vmatprep.subr.bf16.mxu1 %v2825_v0 }
 0x2ca   :  { %v2804_v49 = vpop.eup %2803 }
 0x2cb   :  { %1513 = vst [vmem:[%s3384_s5 + $0x28] sm:$0xff] %v2804_v49  ;;  %2120 = vmatmul.mubr.f32.vlgmr.msra.gmra.mrb[22].mxu0 %v2804_v49 }
 0x2cc   :  { %2603 = vmatpush3.bf16.msra.mxu1 %v2889_v12  ;;  %2624 = vmatpush3.bf16.msra.mxu0 %v2876_v8 }
 0x2cd   :  { %2604 = vmatprep.subr.bf16.mxu1 %v2825_v0  ;;  %2625 = vmatprep.subr.bf16.mxu0 %v2825_v0 }
 0x2ce   :  { %2189 = vmatprep.mubr.msk.f32.mxu0 %vm2826_vm1, %v2827_v4 }
 0x2d0   :  { %2606 = vmatpush3.bf16.msra.mxu1 %v2908_v17  ;;  %2627 = vmatpush3.bf16.msra.mxu0 %v2889_v12 }
 0x2d1   :  { %2607 = vmatprep.subr.bf16.mxu1 %v2825_v0  ;;  %2628 = vmatprep.subr.bf16.mxu0 %v2825_v0 }
 0x2d4   :  { %2609 = vmatpush3.bf16.msra.mxu1 %v2928_v22  ;;  %2630 = vmatpush3.bf16.msra.mxu0 %v2908_v17 }
 0x2d5   :  { %2610 = vmatprep.subr.bf16.mxu1 %v2825_v0  ;;  %2631 = vmatprep.subr.bf16.mxu0 %v2825_v0 }
 0x2d8   :  { %2612 = vmatpush3.bf16.msra.mxu1 %v2948_v27  ;;  %2633 = vmatpush3.bf16.msra.mxu0 %v2928_v22 }
 0x2d9   :  { %2613 = vmatprep.subr.bf16.mxu1 %v2825_v0  ;;  %2634 = vmatprep.subr.bf16.mxu0 %v2825_v0 }
 0x2dc   :  { %2615 = vmatpush3.bf16.msra.mxu1 %v2968_v32  ;;  %2636 = vmatpush3.bf16.msra.mxu0 %v2948_v27 }
 0x2dd   :  { %2616 = vmatprep.subr.bf16.mxu1 %v2825_v0  ;;  %2637 = vmatprep.subr.bf16.mxu0 %v2825_v0 }
 0x2e0   :  { %2618 = vmatpush3.bf16.msra.mxu1 %v2988_v37  ;;  %2639 = vmatpush3.bf16.msra.mxu0 %v2968_v32 }
 0x2e1   :  { %2619 = vmatprep.subr.bf16.mxu1 %v2825_v0  ;;  %2640 = vmatprep.subr.bf16.mxu0 %v2825_v0 }
 0x2e4   :  { %2621 = vmatpush3.bf16.msra.mxu1 %v3008_v42  ;;  %2642 = vmatpush3.bf16.msra.mxu0 %v2988_v37 }
 0x2e5   :  { %2643 = vmatprep.subr.bf16.mxu0 %v2825_v0  ;;  %2646 = vmatprep.subr.bf16.mxu1 %v2825_v0 }
 0x2e8   :  { %2645 = vmatpush3.bf16.msra.mxu0 %v3008_v42 }
 0x2e9   :  { %2670 = vmatprep.subr.bf16.mxu0 %v2825_v0 }
 0x39a   :  { %v798_v50 = vpop.f32.mrb[6].mxu1 }
 0x39b   :  { %v874_v51 = vadd.f32 %v798_v50, %v3085_v61  ;;  %v2086_v52 = vpop.f32.mrb[7].mxu1 }
 0x39d   :  { %2805 = vtanh.f32 %v874_v51 }
 0x39e   :  { %v868_v53 = vpop.f32.mrb[22].mxu0 }
 0x39f   :  { %v880_v54 = vadd.f32 %v868_v53, %v3083_v59  ;;  %v2121_v55 = vpop.f32.mrb[23].mxu0 }
 0x3a1   :  { %2807 = vtanh.f32 %v880_v54 }
 0x3a7   :  { %v2806_v56 = vpop.eup %2805 }
 0x3a8   :  { %1514 = vst [vmem:[%s3384_s5 + $0x30] sm:$0xff] %v2806_v56  ;;  %2155 = vmatmul.mubr.f32.vlgmr.msra.gmra.mrb[8].mxu1 %v2806_v56 }
 0x3a9   :  { %2648 = vmatpush3.bf16.msra.mxu1 %v2876_v8  ;;  %2224 = vmatprep.mubr.msk.f32.mxu1 %vm2826_vm1, %v2827_v4 }
 0x3aa   :  { %2649 = vmatprep.subr.bf16.mxu1 %v2825_v0 }
 0x3ab   :  { %v2808_v57 = vpop.eup %2807 }
 0x3ac   :  { %1515 = vst [vmem:[%s3384_s5 + $0x38] sm:$0xff] %v2808_v57  ;;  %2190 = vmatmul.mubr.f32.vlgmr.msra.gmra.mrb[24].mxu0 %v2808_v57 }
 0x3ad   :  { %2651 = vmatpush3.bf16.msra.mxu1 %v2889_v12  ;;  %2672 = vmatpush3.bf16.msra.mxu0 %v2876_v8 }
 0x3ae   :  { %2652 = vmatprep.subr.bf16.mxu1 %v2825_v0  ;;  %2673 = vmatprep.subr.bf16.mxu0 %v2825_v0 }
 0x3af   :  { %2259 = vmatprep.mubr.msk.f32.mxu0 %vm2826_vm1, %v2827_v4 }
 0x3b1   :  { %2654 = vmatpush3.bf16.msra.mxu1 %v2908_v17  ;;  %2675 = vmatpush3.bf16.msra.mxu0 %v2889_v12 }
 0x3b2   :  { %2655 = vmatprep.subr.bf16.mxu1 %v2825_v0  ;;  %2676 = vmatprep.subr.bf16.mxu0 %v2825_v0 }
 0x3b5   :  { %2657 = vmatpush3.bf16.msra.mxu1 %v2928_v22  ;;  %2678 = vmatpush3.bf16.msra.mxu0 %v2908_v17 }
 0x3b6   :  { %2658 = vmatprep.subr.bf16.mxu1 %v2825_v0  ;;  %2679 = vmatprep.subr.bf16.mxu0 %v2825_v0 }
 0x3b9   :  { %2660 = vmatpush3.bf16.msra.mxu1 %v2948_v27  ;;  %2681 = vmatpush3.bf16.msra.mxu0 %v2928_v22 }
 0x3ba   :  { %2661 = vmatprep.subr.bf16.mxu1 %v2825_v0  ;;  %2682 = vmatprep.subr.bf16.mxu0 %v2825_v0 }
 0x3bd   :  { %2663 = vmatpush3.bf16.msra.mxu1 %v2968_v32  ;;  %2684 = vmatpush3.bf16.msra.mxu0 %v2948_v27 }
 0x3be   :  { %2664 = vmatprep.subr.bf16.mxu1 %v2825_v0  ;;  %2685 = vmatprep.subr.bf16.mxu0 %v2825_v0 }
 0x3c1   :  { %2666 = vmatpush3.bf16.msra.mxu1 %v2988_v37  ;;  %2687 = vmatpush3.bf16.msra.mxu0 %v2968_v32 }
 0x3c2   :  { %2667 = vmatprep.subr.bf16.mxu1 %v2825_v0  ;;  %2688 = vmatprep.subr.bf16.mxu0 %v2825_v0 }
 0x3c5   :  { %2669 = vmatpush3.bf16.msra.mxu1 %v3008_v42  ;;  %2690 = vmatpush3.bf16.msra.mxu0 %v2988_v37 }
 0x3c6   :  { %2691 = vmatprep.subr.bf16.mxu0 %v2825_v0  ;;  %2694 = vmatprep.subr.bf16.mxu1 %v2825_v0 }
 0x3c9   :  { %2693 = vmatpush3.bf16.msra.mxu0 %v3008_v42 }
 0x3ca   :  { %2718 = vmatprep.subr.bf16.mxu0 %v2825_v0 }
 0x47b   :  { %v949_v58 = vpop.f32.mrb[8].mxu1 }
 0x47c   :  { %v1025_v59 = vadd.f32 %v949_v58, %v3089_v2  ;;  %v2156_v60 = vpop.f32.mrb[9].mxu1 }
 0x47e   :  { %2809 = vtanh.f32 %v1025_v59 }
 0x47f   :  { %v1019_v61 = vpop.f32.mrb[24].mxu0 }
 0x480   :  { %v1031_v62 = vadd.f32 %v1019_v61, %v3087_v63  ;;  %v2191_v1 = vpop.f32.mrb[25].mxu0 }
 0x482   :  { %2811 = vtanh.f32 %v1031_v62 }
 0x488   :  { %v2810_v3 = vpop.eup %2809 }
 0x489   :  { %1516 = vst [vmem:[%s3384_s5 + $0x40] sm:$0xff] %v2810_v3  ;;  %2225 = vmatmul.mubr.f32.vlgmr.msra.gmra.mrb[10].mxu1 %v2810_v3 }
 0x48a   :  { %2696 = vmatpush3.bf16.msra.mxu1 %v2876_v8  ;;  %2294 = vmatprep.mubr.msk.f32.mxu1 %vm2826_vm1, %v2827_v4 }
 0x48b   :  { %2697 = vmatprep.subr.bf16.mxu1 %v2825_v0 }
 0x48c   :  { %v2812_v2 = vpop.eup %2811 }
 0x48d   :  { %1517 = vst [vmem:[%s3384_s5 + $0x48] sm:$0xff] %v2812_v2  ;;  %2260 = vmatmul.mubr.f32.vlgmr.msra.gmra.mrb[26].mxu0 %v2812_v2 }
 0x48e   :  { %2699 = vmatpush3.bf16.msra.mxu1 %v2889_v12  ;;  %2720 = vmatpush3.bf16.msra.mxu0 %v2876_v8 }
 0x48f   :  { %2700 = vmatprep.subr.bf16.mxu1 %v2825_v0  ;;  %2721 = vmatprep.subr.bf16.mxu0 %v2825_v0 }
 0x490   :  { %2329 = vmatprep.mubr.msk.f32.mxu0 %vm2826_vm1, %v2827_v4 }
 0x492   :  { %2702 = vmatpush3.bf16.msra.mxu1 %v2908_v17  ;;  %2723 = vmatpush3.bf16.msra.mxu0 %v2889_v12 }
 0x493   :  { %2703 = vmatprep.subr.bf16.mxu1 %v2825_v0  ;;  %2724 = vmatprep.subr.bf16.mxu0 %v2825_v0 }
 0x496   :  { %2705 = vmatpush3.bf16.msra.mxu1 %v2928_v22  ;;  %2726 = vmatpush3.bf16.msra.mxu0 %v2908_v17 }
 0x497   :  { %2706 = vmatprep.subr.bf16.mxu1 %v2825_v0  ;;  %2727 = vmatprep.subr.bf16.mxu0 %v2825_v0 }
 0x49a   :  { %2708 = vmatpush3.bf16.msra.mxu1 %v2948_v27  ;;  %2729 = vmatpush3.bf16.msra.mxu0 %v2928_v22 }
 0x49b   :  { %2709 = vmatprep.subr.bf16.mxu1 %v2825_v0  ;;  %2730 = vmatprep.subr.bf16.mxu0 %v2825_v0 }
 0x49e   :  { %2711 = vmatpush3.bf16.msra.mxu1 %v2968_v32  ;;  %2732 = vmatpush3.bf16.msra.mxu0 %v2948_v27 }
 0x49f   :  { %2712 = vmatprep.subr.bf16.mxu1 %v2825_v0  ;;  %2733 = vmatprep.subr.bf16.mxu0 %v2825_v0 }
 0x4a2   :  { %2714 = vmatpush3.bf16.msra.mxu1 %v2988_v37  ;;  %2735 = vmatpush3.bf16.msra.mxu0 %v2968_v32 }
 0x4a3   :  { %2715 = vmatprep.subr.bf16.mxu1 %v2825_v0  ;;  %2736 = vmatprep.subr.bf16.mxu0 %v2825_v0 }
 0x4a6   :  { %2717 = vmatpush3.bf16.msra.mxu1 %v3008_v42  ;;  %2738 = vmatpush3.bf16.msra.mxu0 %v2988_v37 }
 0x4a7   :  { %2739 = vmatprep.subr.bf16.mxu0 %v2825_v0  ;;  %2742 = vmatprep.subr.bf16.mxu1 %v2825_v0 }
 0x4aa   :  { %2741 = vmatpush3.bf16.msra.mxu0 %v3008_v42 }
 0x4ab   :  { %2766 = vmatprep.subr.bf16.mxu0 %v2825_v0 }
 0x55c   :  { %v1100_v63 = vpop.f32.mrb[10].mxu1 }
 0x55d   :  { %v1176_v6 = vadd.f32 %v1100_v63, %v3093_v7  ;;  %v2226_v9 = vpop.f32.mrb[11].mxu1 }
 0x55f   :  { %2813 = vtanh.f32 %v1176_v6 }
 0x560   :  { %v1170_v11 = vpop.f32.mrb[26].mxu0 }
 0x561   :  { %v1182_v14 = vadd.f32 %v1170_v11, %v3091_v5  ;;  %v2261_v15 = vpop.f32.mrb[27].mxu0 }
 0x563   :  { %2815 = vtanh.f32 %v1182_v14 }
 0x569   :  { %v2814_v16 = vpop.eup %2813 }
 0x56a   :  { %1518 = vst [vmem:[%s3384_s5 + $0x50] sm:$0xff] %v2814_v16  ;;  %2295 = vmatmul.mubr.f32.vlgmr.msra.gmra.mrb[12].mxu1 %v2814_v16 }
 0x56b   :  { %2744 = vmatpush3.bf16.msra.mxu1 %v2876_v8  ;;  %2364 = vmatprep.mubr.msk.f32.mxu1 %vm2826_vm1, %v2827_v4 }
 0x56c   :  { %2745 = vmatprep.subr.bf16.mxu1 %v2825_v0 }
 0x56d   :  { %v2816_v7 = vpop.eup %2815 }
 0x56e   :  { %1519 = vst [vmem:[%s3384_s5 + $0x58] sm:$0xff] %v2816_v7  ;;  %2330 = vmatmul.mubr.f32.vlgmr.msra.gmra.mrb[28].mxu0 %v2816_v7 }
 0x56f   :  { %2747 = vmatpush3.bf16.msra.mxu1 %v2889_v12  ;;  %2768 = vmatpush3.bf16.msra.mxu0 %v2876_v8 }
 0x570   :  { %2748 = vmatprep.subr.bf16.mxu1 %v2825_v0  ;;  %2769 = vmatprep.subr.bf16.mxu0 %v2825_v0 }
 0x571   :  { %2399 = vmatprep.mubr.msk.f32.mxu0 %vm2826_vm1, %v2827_v4 }
 0x573   :  { %2750 = vmatpush3.bf16.msra.mxu1 %v2908_v17  ;;  %2771 = vmatpush3.bf16.msra.mxu0 %v2889_v12 }
 0x574   :  { %2751 = vmatprep.subr.bf16.mxu1 %v2825_v0  ;;  %2772 = vmatprep.subr.bf16.mxu0 %v2825_v0 }
 0x577   :  { %2753 = vmatpush3.bf16.msra.mxu1 %v2928_v22  ;;  %2774 = vmatpush3.bf16.msra.mxu0 %v2908_v17 }
 0x578   :  { %2754 = vmatprep.subr.bf16.mxu1 %v2825_v0  ;;  %2775 = vmatprep.subr.bf16.mxu0 %v2825_v0 }
 0x57b   :  { %2756 = vmatpush3.bf16.msra.mxu1 %v2948_v27  ;;  %2777 = vmatpush3.bf16.msra.mxu0 %v2928_v22 }
 0x57c   :  { %2757 = vmatprep.subr.bf16.mxu1 %v2825_v0  ;;  %2778 = vmatprep.subr.bf16.mxu0 %v2825_v0 }
 0x57f   :  { %2759 = vmatpush3.bf16.msra.mxu1 %v2968_v32  ;;  %2780 = vmatpush3.bf16.msra.mxu0 %v2948_v27 }
 0x580   :  { %2760 = vmatprep.subr.bf16.mxu1 %v2825_v0  ;;  %2781 = vmatprep.subr.bf16.mxu0 %v2825_v0 }
 0x583   :  { %2762 = vmatpush3.bf16.msra.mxu1 %v2988_v37  ;;  %2783 = vmatpush3.bf16.msra.mxu0 %v2968_v32 }
 0x584   :  { %2763 = vmatprep.subr.bf16.mxu1 %v2825_v0  ;;  %2784 = vmatprep.subr.bf16.mxu0 %v2825_v0 }
 0x587   :  { %2765 = vmatpush3.bf16.msra.mxu1 %v3008_v42  ;;  %2786 = vmatpush3.bf16.msra.mxu0 %v2988_v37 }
 0x588   :  { %2787 = vmatprep.subr.bf16.mxu0 %v2825_v0 }
 0x58b   :  { %2789 = vmatpush3.bf16.msra.mxu0 %v3008_v42 }
 0x63d   :  { %v1251_v4 = vpop.f32.mrb[12].mxu1 }
 0x63e   :  { %v1327_v8 = vadd.f32 %v1251_v4, %v3097_v13  ;;  %v2296_v12 = vpop.f32.mrb[13].mxu1 }
 0x640   :  { %2817 = vtanh.f32 %v1327_v8 }
 0x641   :  { %v1321_v17 = vpop.f32.mrb[28].mxu0 }
 0x642   :  { %v1333_v22 = vadd.f32 %v1321_v17, %v3095_v10  ;;  %v2331_v27 = vpop.f32.mrb[29].mxu0 }
 0x644   :  { %2819 = vtanh.f32 %v1333_v22 }
 0x64a   :  { %v2818_v32 = vpop.eup %2817 }
 0x64b   :  { %1520 = vst [vmem:[%s3384_s5 + $0x60] sm:$0xff] %v2818_v32  ;;  %2365 = vmatmul.mubr.f32.vlgmr.msra.gmra.mrb[14].mxu1 %v2818_v32 }
 0x64e   :  { %v2820_v37 = vpop.eup %2819 }
 0x64f   :  { %1521 = vst [vmem:[%s3384_s5 + $0x68] sm:$0xff] %v2820_v37  ;;  %2400 = vmatmul.mubr.f32.vlgmr.msra.gmra.mrb[30].mxu0 %v2820_v37 }
 0x71e   :  { %v1402_v0 = vpop.f32.mrb[14].mxu1 }
 0x71f   :  { %v1478_v42 = vadd.f32 %v1402_v0, %v3101_v23  ;;  %v2366_v5 = vpop.f32.mrb[15].mxu1 }
 0x721   :  { %2821 = vtanh.f32 %v1478_v42 }
 0x722   :  { %v1472_v10 = vpop.f32.mrb[30].mxu0 }
 0x723   :  { %v1484_v13 = vadd.f32 %v1472_v10, %v3099_v19  ;;  %v2401_v18 = vpop.f32.mrb[31].mxu0 }
 0x725   :  { %2823 = vtanh.f32 %v1484_v13 }
 0x72b   :  { %v2822_v20 = vpop.eup %2821 }
 0x72c   :  { %1522 = vst [vmem:[%s3384_s5 + $0x70] sm:$0xff] %v2822_v20 }
 0x72f   :  { %v2824_v21 = vpop.eup %2823 }
 0x730   :  { %1523 = vst [vmem:[%s3384_s5 + $0x78] sm:$0xff] %v2824_v21 }

</bundles_post_ra>
